<compile_context>
chip_gen: v7x
topology: tpu7x:2x2x1
jax: 0.10.0
libtpu: 0.0.40
codegen_flags: <defaults>
</compile_context>

<pallas_src>
import functools
import math

import jax
import jax.numpy as jnp
from jax.experimental import pallas as pl
from jax.experimental.pallas import tpu as pltpu


def _round_up(x, m):
    return ((x + m - 1) // m) * m


def _device_output_kernel(
    dec_ref,    # (TB*L, H)   mmt_dec_output rows (compute dtype)
    ocr_ref,    # (TB*N, H)   mmt_ocr_output rows (compute dtype)
    mask_ref,   # (TB, N)     ocr_mask (f32)
    wdec_ref,   # (H, Qp+V)   fused [(1/sqrt(Q))*Wq (zero-padded to Qp) | Wc]
    bdec_ref,   # (1, Qp+V)   fused bias (f32)
    wk_ref,     # (H, Qp)     OcrPtrNet.key weight (zero-padded), (in, out)
    bk_ref,     # (1, Qp)     key bias (f32, zero-padded)
    out_ref,    # (TB*L, V+N) cat([fixed_scores, dynamic_ocr_scores], -1)
    *,
    batch_tile,  # TB
    seq_len,     # L
    num_ocr,     # N
    num_vocab,   # V
    qk_pad,      # Qp (multiple of 128)
):
    cdt = dec_ref.dtype

    # One fused MXU matmul over TB*L rows for classifier + (pre-scaled) query.
    # Query columns come FIRST and Qp is a multiple of 128, so both column
    # slices below start on lane-aligned boundaries.
    dec_proj = jax.lax.dot_general(
        dec_ref[...], wdec_ref[...],
        dimension_numbers=(((1,), (0,)), ((), ())),
        preferred_element_type=jnp.float32,
    ) + bdec_ref[...]                                       # (TB*L, Qp+V) f32

    # fixed_scores: direct sliced store -- no concat temp, single pass.
    out_ref[:, :num_vocab] = dec_proj[:, qk_pad:].astype(out_ref.dtype)

    # OcrPtrNet: key projection ('nn', pre-transposed weight) + batched q.k^T.
    q = dec_proj[:, :qk_pad].astype(cdt).reshape(batch_tile, seq_len, qk_pad)
    k = jax.lax.dot_general(
        ocr_ref[...], wk_ref[...],
        dimension_numbers=(((1,), (0,)), ((), ())),
        preferred_element_type=jnp.float32,
    ) + bk_ref[...]                                          # (TB*N, Qp) f32
    k = k.astype(cdt).reshape(batch_tile, num_ocr, qk_pad)

    scores = jax.lax.dot_general(                             # batched 'nt'
        q, k,
        dimension_numbers=(((2,), (2,)), ((0,), (0,))),
        preferred_element_type=jnp.float32,
    )                                                         # (TB, L, N) f32

    # NOTE: reproduces the PyTorch module exactly -- the RAW ocr mask
    # (unsqueezed on dim 1) is added; (1-mask)*-10000 is dead code upstream.
    scores = scores + mask_ref[...][:, None, :]

    out_ref[:, num_vocab:] = scores.reshape(
        batch_tile * seq_len, num_ocr).astype(out_ref.dtype)


def _pick_batch_tile(batch, seq_len, target_rows=256):
    """Batch elements per grid step so TB*L is near target_rows (256-wide MXU)."""
    tb = max(1, target_rows // max(seq_len, 1))
    if tb >= batch:
        return batch                    # single step; blocks equal full dims
    # Multi-step grid: make tb a multiple of 8 so every row block
    # (TB*L, TB*N, TB) stays sublane-aligned regardless of L / N.
    tb = _round_up(tb, 8)
    return min(tb, batch)


def _vmem_limit_bytes(tb, seq_len, num_ocr, hidden, qk_pad, num_vocab,
                      compute_dtype, out_dtype):
    """Rough VMEM budget -> explicit vmem_limit_bytes (review: raise on v5e)."""
    cs = jnp.dtype(compute_dtype).itemsize
    os = jnp.dtype(out_dtype).itemsize
    rows_dec, rows_ocr = tb * seq_len, tb * num_ocr
    streams = 2 * (rows_dec * hidden * cs + rows_ocr * hidden * cs
                   + tb * num_ocr * 4
                   + rows_dec * (num_vocab + num_ocr) * os)      # double-buffered
    weights = (hidden * (qk_pad + num_vocab) + hidden * qk_pad) * cs \
        + (2 * qk_pad + num_vocab) * 4                           # single-buffered
    interm = (rows_dec * (qk_pad + num_vocab) + rows_ocr * qk_pad
              + rows_dec * num_ocr) * 4                          # f32 temporaries
    budget = int(1.5 * (streams + weights + interm)) + (4 << 20)
    return max(32 << 20, min(64 << 20, budget))


def device_forward_output(dec, ocr, ocr_mask, params,
                          compute_dtype=jnp.bfloat16,
                          out_dtype=jnp.float32,
                          target_rows=256):
    """Pallas implementation of DEVICE.forward_output.

    dec:      (B, L, H)  mmt_dec_output
    ocr:      (B, N, H)  mmt_ocr_output
    ocr_mask: (B, N)
    params:   dict of classifier / ocr_ptr_net weights (PyTorch (out,in) layout)
    Returns:  (B, L, V + N) scores.
    """
    B, L, H = dec.shape
    _, N, _ = ocr.shape
    wc, bc = params["classifier_w"], params["classifier_b"]
    wq, bq = params["query_w"], params["query_b"]
    wk, bk = params["key_w"], params["key_b"]
    V = wc.shape[0]
    Q = wq.shape[0]
    Qp = _round_up(Q, 128)   # lane-aligned query/classifier column boundary

    # ---- one-time parameter prep (wrapper side, constant-foldable) ----------
    scale = 1.0 / math.sqrt(Q)   # fold 1/sqrt(Q) into Wq / bq (exact)
    wq_s = (wq * scale).T.astype(jnp.float32)                    # (H, Q)
    bq_s = (bq * scale).astype(jnp.float32)
    # Zero-pad query/key columns to Qp: math is exact, layout is lane-aligned.
    wq_p = jnp.zeros((H, Qp), jnp.float32).at[:, :Q].set(wq_s)
    bq_p = jnp.zeros((Qp,), jnp.float32).at[:Q].set(bq_s)
    wk_p = jnp.zeros((H, Qp), jnp.float32).at[:, :Q].set(wk.T.astype(jnp.float32))
    bk_p = jnp.zeros((Qp,), jnp.float32).at[:Q].set(bk.astype(jnp.float32))

    # Fused dec-side weight: QUERY COLUMNS FIRST, then the classifier.
    w_dec = jnp.concatenate(
        [wq_p, wc.T.astype(jnp.float32)], axis=1).astype(compute_dtype)   # (H, Qp+V)
    b_dec = jnp.concatenate([bq_p, bc.astype(jnp.float32)]).reshape(1, Qp + V)
    w_key = wk_p.astype(compute_dtype)                                    # (H, Qp)
    b_key = bk_p.reshape(1, Qp)

    # ---- batch tiling: ~256 rows/step, pad B to a multiple of the tile ------
    TB = _pick_batch_tile(B, L, target_rows)
    B_pad = _round_up(B, TB)
    pad = B_pad - B
    if pad:
        dec = jnp.pad(dec, ((0, pad), (0, 0), (0, 0)))
        ocr = jnp.pad(ocr, ((0, pad), (0, 0), (0, 0)))
        ocr_mask = jnp.pad(ocr_mask, ((0, pad), (0, 0)))

    # 2-D row-major views: the big reshapes live in the wrapper (free), not in
    # the kernel hot loop.
    dec2 = dec.astype(compute_dtype).reshape(B_pad * L, H)
    ocr2 = ocr.astype(compute_dtype).reshape(B_pad * N, H)
    mask2 = ocr_mask.astype(jnp.float32)

    grid = (B_pad // TB,)
    kernel = functools.partial(
        _device_output_kernel,
        batch_tile=TB, seq_len=L, num_ocr=N, num_vocab=V, qk_pad=Qp)
    vmem_limit = _vmem_limit_bytes(TB, L, N, H, Qp, V, compute_dtype, out_dtype)

    def build_call(weight_mode):
        wkw = {} if weight_mode is None else {"pipeline_mode": weight_mode}
        return pl.pallas_call(
            kernel,
            out_shape=jax.ShapeDtypeStruct((B_pad * L, V + N), out_dtype),
            grid_spec=pltpu.PrefetchScalarGridSpec(
                num_scalar_prefetch=0,
                grid=grid,
                in_specs=[
                    pl.BlockSpec((TB * L, H), lambda b: (b, 0)),          # dec rows
                    pl.BlockSpec((TB * N, H), lambda b: (b, 0)),          # ocr rows
                    pl.BlockSpec((TB, N), lambda b: (b, 0)),              # ocr mask
                    pl.BlockSpec((H, Qp + V), lambda b: (0, 0), **wkw),   # [s*Wq|Wc]
                    pl.BlockSpec((1, Qp + V), lambda b: (0, 0), **wkw),   # fused bias
                    pl.BlockSpec((H, Qp), lambda b: (0, 0), **wkw),       # Wk
                    pl.BlockSpec((1, Qp), lambda b: (0, 0), **wkw),       # bk
                ],
                out_specs=pl.BlockSpec((TB * L, V + N), lambda b: (b, 0)),
            ),
            compiler_params=pltpu.CompilerParams(
                dimension_semantics=("parallel",),
                vmem_limit_bytes=vmem_limit,
            ),
        )

    args = (dec2, ocr2, mask2, w_dec, b_dec, w_key, b_key)
    try:
        # Grid-invariant weights/biases single-buffered (halves their VMEM).
        out2d = build_call(pl.Buffered(1))(*args)
    except Exception:
        # TODO(synk): some jax builds reject single-buffered operands; fall
        # back to default double buffering (identical semantics).
        out2d = build_call(None)(*args)

    return out2d.reshape(B_pad, L, V + N)[:B]


def _reference(dec, ocr, ocr_mask, params):
    """Plain-JAX f32 reference reproducing the PyTorch forward_output."""
    wc, bc = params["classifier_w"], params["classifier_b"]
    wq, bq = params["query_w"], params["query_b"]
    wk, bk = params["key_w"], params["key_b"]
    fixed = dec @ wc.T + bc
    q = dec @ wq.T + bq
    k = ocr @ wk.T + bk
    scores = jnp.einsum("bld,bnd->bln", q, k) / math.sqrt(wq.shape[0])
    scores = scores + ocr_mask[:, None, :]
    return jnp.concatenate([fixed, scores], axis=-1)


if __name__ == "__main__":
    # Small synthetic shapes consistent with the module:
    #   B=2 batch, L=8 decoding steps (max_length), H=32 hidden_size,
    #   N=16 num_ocr, V=32 common-vocab size (= num_choices = query_key_size).
    B, L, H, N, V = 2, 8, 32, 16, 32
    key = jax.random.PRNGKey(0)
    (k_dec, k_ocr, k_mask, k_wc, k_bc, k_wq, k_bq, k_wk, k_bk) = jax.random.split(key, 9)

    dec = jax.random.normal(k_dec, (B, L, H), jnp.float32)   # mmt_dec_output
    ocr = jax.random.normal(k_ocr, (B, N, H), jnp.float32)   # mmt_ocr_output
    # binary ocr mask (as produced by _batch_padding)
    ocr_mask = (jax.random.uniform(k_mask, (B, N)) > 0.3).astype(jnp.float32)

    # Deterministic synthetic parameters (PyTorch layout: (out, in)).
    params = {
        "classifier_w": jax.random.normal(k_wc, (V, H), jnp.float32) * 0.05,
        "classifier_b": jax.random.normal(k_bc, (V,), jnp.float32) * 0.05,
        "query_w": jax.random.normal(k_wq, (V, H), jnp.float32) * 0.05,   # query_key_size = V
        "query_b": jax.random.normal(k_bq, (V,), jnp.float32) * 0.05,
        "key_w": jax.random.normal(k_wk, (V, H), jnp.float32) * 0.05,
        "key_b": jax.random.normal(k_bk, (V,), jnp.float32) * 0.05,
    }

    # TODO(synk): obj/ocr/word embedding stacks and the RoBERTa-based decoder
    # depend on external pretrained checkpoints and string processing; only
    # the dense forward_output head is implemented as a kernel.

    ref = _reference(dec, ocr, ocr_mask, params)

    # Exact-semantics path (f32 compute).
    out_f32 = device_forward_output(dec, ocr, ocr_mask, params,
                                    compute_dtype=jnp.float32)
    jax.block_until_ready(out_f32)
    assert out_f32.shape == (B, L, V + N), out_f32.shape
    assert jnp.allclose(out_f32, ref, atol=2e-4, rtol=2e-4), "f32 mismatch vs reference"

    # Fast path: bf16 MXU inputs, f32 accumulation.
    out_bf16 = device_forward_output(dec, ocr, ocr_mask, params,
                                     compute_dtype=jnp.bfloat16)
    jax.block_until_ready(out_bf16)
    assert out_bf16.shape == (B, L, V + N), out_bf16.shape
    assert jnp.allclose(out_bf16, ref, atol=2e-2, rtol=2e-2), "bf16 mismatch vs reference"

    print("KERNEL_OK")
</pallas_src>

<mosaic_0001>
module attributes {stable_mosaic.version = 11 : i64} {
  func.func @_device_output_kernel(%arg0: i32, %arg1: memref<16x32xf32, #tpu.memory_space<vmem>>, %arg2: memref<32x32xf32, #tpu.memory_space<vmem>>, %arg3: memref<2x16xf32, #tpu.memory_space<vmem>>, %arg4: memref<32x160xf32, #tpu.memory_space<vmem>>, %arg5: memref<1x160xf32, #tpu.memory_space<vmem>>, %arg6: memref<32x128xf32, #tpu.memory_space<vmem>>, %arg7: memref<1x128xf32, #tpu.memory_space<vmem>>, %arg8: memref<16x48xf32, #tpu.memory_space<vmem>>) attributes {dimension_semantics = [#tpu.dimension_semantics<parallel>], iteration_bounds = array<i64: 1>, scalar_prefetch = 0 : i64, scratch_operands = 0 : i64, tpu.core_type = #tpu.core_type<tc>, window_params = [{transform_indices = @transform_0, window_bounds = array<i64: 16, 32>}, {transform_indices = @transform_1, window_bounds = array<i64: 32, 32>}, {transform_indices = @transform_2, window_bounds = array<i64: 2, 16>}, {pipeline_mode = #tpu.pipeline_mode<synchronous>, transform_indices = @transform_3, window_bounds = array<i64: 32, 160>}, {pipeline_mode = #tpu.pipeline_mode<synchronous>, transform_indices = @transform_4, window_bounds = array<i64: 1, 160>}, {pipeline_mode = #tpu.pipeline_mode<synchronous>, transform_indices = @transform_5, window_bounds = array<i64: 32, 128>}, {pipeline_mode = #tpu.pipeline_mode<synchronous>, transform_indices = @transform_6, window_bounds = array<i64: 1, 128>}, {transform_indices = @transform_7, window_bounds = array<i64: 16, 48>}]} {
    %c0 = arith.constant 0 : index
    %c0_0 = arith.constant 0 : index
    %0 = vector.load %arg1[%c0, %c0_0] : memref<16x32xf32, #tpu.memory_space<vmem>>, vector<16x32xf32>
    %c0_1 = arith.constant 0 : index
    %c0_2 = arith.constant 0 : index
    %1 = vector.load %arg4[%c0_1, %c0_2] : memref<32x160xf32, #tpu.memory_space<vmem>>, vector<32x160xf32>
    %cst = arith.constant dense<0.000000e+00> : vector<16x160xf32>
    %2 = tpu.matmul %0, %1, %cst {dimension_numbers = #tpu.dot_dimension_numbers<[1], [0], [0], [1], [0, 0, 1, 1], [], []>} : vector<16x32xf32>, vector<32x160xf32>, vector<16x160xf32> -> vector<16x160xf32>
    %c0_3 = arith.constant 0 : index
    %c0_4 = arith.constant 0 : index
    %3 = vector.load %arg5[%c0_3, %c0_4] : memref<1x160xf32, #tpu.memory_space<vmem>>, vector<1x160xf32>
    %4 = vector.broadcast %3 : vector<1x160xf32> to vector<16x160xf32>
    %5 = arith.addf %2, %4 : vector<16x160xf32>
    %6 = vector.extract_strided_slice %5 {offsets = [0, 128], sizes = [16, 32], strides = [1, 1]} : vector<16x160xf32> to vector<16x32xf32>
    %c0_5 = arith.constant 0 : index
    %c0_6 = arith.constant 0 : index
    %7 = vector.load %arg8[%c0_5, %c0_6] : memref<16x48xf32, #tpu.memory_space<vmem>>, vector<16x32xf32>
    tpu.vector_store %arg8[%c0_5, %c0_6], %6 {strides = array<i32>} : memref<16x48xf32, #tpu.memory_space<vmem>>, vector<16x32xf32>,
    %8 = vector.extract_strided_slice %5 {offsets = [0, 0], sizes = [16, 128], strides = [1, 1]} : vector<16x160xf32> to vector<16x128xf32>
    %9 = vector.shape_cast %8 : vector<16x128xf32> to vector<2x8x128xf32>
    %c0_7 = arith.constant 0 : index
    %c0_8 = arith.constant 0 : index
    %10 = vector.load %arg2[%c0_7, %c0_8] : memref<32x32xf32, #tpu.memory_space<vmem>>, vector<32x32xf32>
    %c0_9 = arith.constant 0 : index
    %c0_10 = arith.constant 0 : index
    %11 = vector.load %arg6[%c0_9, %c0_10] : memref<32x128xf32, #tpu.memory_space<vmem>>, vector<32x128xf32>
    %cst_11 = arith.constant dense<0.000000e+00> : vector<32x128xf32>
    %12 = tpu.matmul %10, %11, %cst_11 {dimension_numbers = #tpu.dot_dimension_numbers<[1], [0], [0], [1], [0, 0, 1, 1], [], []>} : vector<32x32xf32>, vector<32x128xf32>, vector<32x128xf32> -> vector<32x128xf32>
    %c0_12 = arith.constant 0 : index
    %c0_13 = arith.constant 0 : index
    %13 = vector.load %arg7[%c0_12, %c0_13] : memref<1x128xf32, #tpu.memory_space<vmem>>, vector<1x128xf32>
    %14 = vector.broadcast %13 : vector<1x128xf32> to vector<32x128xf32>
    %15 = arith.addf %12, %14 : vector<32x128xf32>
    %16 = vector.shape_cast %15 : vector<32x128xf32> to vector<2x16x128xf32>
    %cst_14 = arith.constant dense<0.000000e+00> : vector<2x8x16xf32>
    %17 = tpu.matmul %9, %16, %cst_14 {dimension_numbers = #tpu.dot_dimension_numbers<[2], [2], [1], [1], [0, 0, 0, 1, 1, 1], [0], [0]>} : vector<2x8x128xf32>, vector<2x16x128xf32>, vector<2x8x16xf32> -> vector<2x8x16xf32>
    %c0_15 = arith.constant 0 : index
    %c0_16 = arith.constant 0 : index
    %18 = vector.load %arg3[%c0_15, %c0_16] : memref<2x16xf32, #tpu.memory_space<vmem>>, vector<2x16xf32>
    %19 = vector.shape_cast %18 : vector<2x16xf32> to vector<2x1x16xf32>
    %20 = vector.broadcast %19 : vector<2x1x16xf32> to vector<2x8x16xf32>
    %21 = arith.addf %17, %20 : vector<2x8x16xf32>
    %22 = vector.shape_cast %21 : vector<2x8x16xf32> to vector<16x16xf32>
    %c0_17 = arith.constant 0 : index
    %c32 = arith.constant 32 : index
    %23 = vector.load %arg8[%c0_17, %c32] : memref<16x48xf32, #tpu.memory_space<vmem>>, vector<16x16xf32>
    tpu.vector_store %arg8[%c0_17, %c32], %22 {strides = array<i32>} : memref<16x48xf32, #tpu.memory_space<vmem>>, vector<16x16xf32>,
    return
  }
  func.func @transform_0(%arg0: i32) -> (i32, i32) {
    %c0_i32 = arith.constant 0 : i32
    %c0_i32_0 = arith.constant 0 : i32
    return %arg0, %c0_i32 : i32, i32
  }
  func.func @transform_1(%arg0: i32) -> (i32, i32) {
    %c0_i32 = arith.constant 0 : i32
    %c0_i32_0 = arith.constant 0 : i32
    return %arg0, %c0_i32 : i32, i32
  }
  func.func @transform_2(%arg0: i32) -> (i32, i32) {
    %c0_i32 = arith.constant 0 : i32
    %c0_i32_0 = arith.constant 0 : i32
    return %arg0, %c0_i32 : i32, i32
  }
  func.func @transform_3(%arg0: i32) -> (i32, i32) {
    %c0_i32 = arith.constant 0 : i32
    %c0_i32_0 = arith.constant 0 : i32
    %c0_i32_1 = arith.constant 0 : i32
    return %c0_i32, %c0_i32_0 : i32, i32
  }
  func.func @transform_4(%arg0: i32) -> (i32, i32) {
    %c0_i32 = arith.constant 0 : i32
    %c0_i32_0 = arith.constant 0 : i32
    %c0_i32_1 = arith.constant 0 : i32
    return %c0_i32, %c0_i32_0 : i32, i32
  }
  func.func @transform_5(%arg0: i32) -> (i32, i32) {
    %c0_i32 = arith.constant 0 : i32
    %c0_i32_0 = arith.constant 0 : i32
    %c0_i32_1 = arith.constant 0 : i32
    return %c0_i32, %c0_i32_0 : i32, i32
  }
  func.func @transform_6(%arg0: i32) -> (i32, i32) {
    %c0_i32 = arith.constant 0 : i32
    %c0_i32_0 = arith.constant 0 : i32
    %c0_i32_1 = arith.constant 0 : i32
    return %c0_i32, %c0_i32_0 : i32, i32
  }
  func.func @transform_7(%arg0: i32) -> (i32, i32) {
    %c0_i32 = arith.constant 0 : i32
    %c0_i32_0 = arith.constant 0 : i32
    return %arg0, %c0_i32 : i32, i32
  }
}

module attributes {stable_mosaic.version = 11 : i64} {
  func.func @_device_output_kernel(%arg0: i32, %arg1: memref<16x32xf32, #tpu.memory_space<vmem>>, %arg2: memref<32x32xf32, #tpu.memory_space<vmem>>, %arg3: memref<2x16xf32, #tpu.memory_space<vmem>>, %arg4: memref<32x160xf32, #tpu.memory_space<vmem>>, %arg5: memref<1x160xf32, #tpu.memory_space<vmem>>, %arg6: memref<32x128xf32, #tpu.memory_space<vmem>>, %arg7: memref<1x128xf32, #tpu.memory_space<vmem>>, %arg8: memref<16x48xf32, #tpu.memory_space<vmem>>) attributes {dimension_semantics = [#tpu.dimension_semantics<parallel>], iteration_bounds = array<i64: 1>, scalar_prefetch = 0 : i64, scratch_operands = 0 : i64, tpu.core_type = #tpu.core_type<tc>, window_params = [{transform_indices = @transform_0, window_bounds = array<i64: 16, 32>}, {transform_indices = @transform_1, window_bounds = array<i64: 32, 32>}, {transform_indices = @transform_2, window_bounds = array<i64: 2, 16>}, {pipeline_mode = #tpu.pipeline_mode<synchronous>, transform_indices = @transform_3, window_bounds = array<i64: 32, 160>}, {pipeline_mode = #tpu.pipeline_mode<synchronous>, transform_indices = @transform_4, window_bounds = array<i64: 1, 160>}, {pipeline_mode = #tpu.pipeline_mode<synchronous>, transform_indices = @transform_5, window_bounds = array<i64: 32, 128>}, {pipeline_mode = #tpu.pipeline_mode<synchronous>, transform_indices = @transform_6, window_bounds = array<i64: 1, 128>}, {transform_indices = @transform_7, window_bounds = array<i64: 16, 48>}]} {
    %c0 = arith.constant 0 : index
    %c0_0 = arith.constant 0 : index
    %0 = vector.load %arg1[%c0, %c0_0] : memref<16x32xf32, #tpu.memory_space<vmem>>, vector<16x32xf32>
    %c0_1 = arith.constant 0 : index
    %c0_2 = arith.constant 0 : index
    %1 = vector.load %arg4[%c0_1, %c0_2] : memref<32x160xf32, #tpu.memory_space<vmem>>, vector<32x160xf32>
    %cst = arith.constant dense<0.000000e+00> : vector<16x160xf32>
    %2 = tpu.matmul %0, %1, %cst {dimension_numbers = #tpu.dot_dimension_numbers<[1], [0], [0], [1], [0, 0, 1, 1], [], []>} : vector<16x32xf32>, vector<32x160xf32>, vector<16x160xf32> -> vector<16x160xf32>
    %c0_3 = arith.constant 0 : index
    %c0_4 = arith.constant 0 : index
    %3 = vector.load %arg5[%c0_3, %c0_4] : memref<1x160xf32, #tpu.memory_space<vmem>>, vector<1x160xf32>
    %4 = vector.broadcast %3 : vector<1x160xf32> to vector<16x160xf32>
    %5 = arith.addf %2, %4 : vector<16x160xf32>
    %6 = vector.extract_strided_slice %5 {offsets = [0, 128], sizes = [16, 32], strides = [1, 1]} : vector<16x160xf32> to vector<16x32xf32>
    %c0_5 = arith.constant 0 : index
    %c0_6 = arith.constant 0 : index
    %7 = vector.load %arg8[%c0_5, %c0_6] : memref<16x48xf32, #tpu.memory_space<vmem>>, vector<16x32xf32>
    tpu.vector_store %arg8[%c0_5, %c0_6], %6 {strides = array<i32>} : memref<16x48xf32, #tpu.memory_space<vmem>>, vector<16x32xf32>,
    %8 = vector.extract_strided_slice %5 {offsets = [0, 0], sizes = [16, 128], strides = [1, 1]} : vector<16x160xf32> to vector<16x128xf32>
    %9 = vector.shape_cast %8 : vector<16x128xf32> to vector<2x8x128xf32>
    %c0_7 = arith.constant 0 : index
    %c0_8 = arith.constant 0 : index
    %10 = vector.load %arg2[%c0_7, %c0_8] : memref<32x32xf32, #tpu.memory_space<vmem>>, vector<32x32xf32>
    %c0_9 = arith.constant 0 : index
    %c0_10 = arith.constant 0 : index
    %11 = vector.load %arg6[%c0_9, %c0_10] : memref<32x128xf32, #tpu.memory_space<vmem>>, vector<32x128xf32>
    %cst_11 = arith.constant dense<0.000000e+00> : vector<32x128xf32>
    %12 = tpu.matmul %10, %11, %cst_11 {dimension_numbers = #tpu.dot_dimension_numbers<[1], [0], [0], [1], [0, 0, 1, 1], [], []>} : vector<32x32xf32>, vector<32x128xf32>, vector<32x128xf32> -> vector<32x128xf32>
    %c0_12 = arith.constant 0 : index
    %c0_13 = arith.constant 0 : index
    %13 = vector.load %arg7[%c0_12, %c0_13] : memref<1x128xf32, #tpu.memory_space<vmem>>, vector<1x128xf32>
    %14 = vector.broadcast %13 : vector<1x128xf32> to vector<32x128xf32>
    %15 = arith.addf %12, %14 : vector<32x128xf32>
    %16 = vector.shape_cast %15 : vector<32x128xf32> to vector<2x16x128xf32>
    %cst_14 = arith.constant dense<0.000000e+00> : vector<2x8x16xf32>
    %17 = tpu.matmul %9, %16, %cst_14 {dimension_numbers = #tpu.dot_dimension_numbers<[2], [2], [1], [1], [0, 0, 0, 1, 1, 1], [0], [0]>} : vector<2x8x128xf32>, vector<2x16x128xf32>, vector<2x8x16xf32> -> vector<2x8x16xf32>
    %c0_15 = arith.constant 0 : index
    %c0_16 = arith.constant 0 : index
    %18 = vector.load %arg3[%c0_15, %c0_16] : memref<2x16xf32, #tpu.memory_space<vmem>>, vector<2x16xf32>
    %19 = vector.shape_cast %18 : vector<2x16xf32> to vector<2x1x16xf32>
    %20 = vector.broadcast %19 : vector<2x1x16xf32> to vector<2x8x16xf32>
    %21 = arith.addf %17, %20 : vector<2x8x16xf32>
    %22 = vector.shape_cast %21 : vector<2x8x16xf32> to vector<16x16xf32>
    %c0_17 = arith.constant 0 : index
    %c32 = arith.constant 32 : index
    %23 = vector.load %arg8[%c0_17, %c32] : memref<16x48xf32, #tpu.memory_space<vmem>>, vector<16x16xf32>
    tpu.vector_store %arg8[%c0_17, %c32], %22 {strides = array<i32>} : memref<16x48xf32, #tpu.memory_space<vmem>>, vector<16x16xf32>,
    return
  }
  func.func @transform_0(%arg0: i32) -> (i32, i32) {
    %c0_i32 = arith.constant 0 : i32
    %c0_i32_0 = arith.constant 0 : i32
    return %arg0, %c0_i32 : i32, i32
  }
  func.func @transform_1(%arg0: i32) -> (i32, i32) {
    %c0_i32 = arith.constant 0 : i32
    %c0_i32_0 = arith.constant 0 : i32
    return %arg0, %c0_i32 : i32, i32
  }
  func.func @transform_2(%arg0: i32) -> (i32, i32) {
    %c0_i32 = arith.constant 0 : i32
    %c0_i32_0 = arith.constant 0 : i32
    return %arg0, %c0_i32 : i32, i32
  }
  func.func @transform_3(%arg0: i32) -> (i32, i32) {
    %c0_i32 = arith.constant 0 : i32
    %c0_i32_0 = arith.constant 0 : i32
    %c0_i32_1 = arith.constant 0 : i32
    return %c0_i32, %c0_i32_0 : i32, i32
  }
  func.func @transform_4(%arg0: i32) -> (i32, i32) {
    %c0_i32 = arith.constant 0 : i32
    %c0_i32_0 = arith.constant 0 : i32
    %c0_i32_1 = arith.constant 0 : i32
    return %c0_i32, %c0_i32_0 : i32, i32
  }
  func.func @transform_5(%arg0: i32) -> (i32, i32) {
    %c0_i32 = arith.constant 0 : i32
    %c0_i32_0 = arith.constant 0 : i32
    %c0_i32_1 = arith.constant 0 : i32
    return %c0_i32, %c0_i32_0 : i32, i32
  }
  func.func @transform_6(%arg0: i32) -> (i32, i32) {
    %c0_i32 = arith.constant 0 : i32
    %c0_i32_0 = arith.constant 0 : i32
    %c0_i32_1 = arith.constant 0 : i32
    return %c0_i32, %c0_i32_0 : i32, i32
  }
  func.func @transform_7(%arg0: i32) -> (i32, i32) {
    %c0_i32 = arith.constant 0 : i32
    %c0_i32_0 = arith.constant 0 : i32
    return %arg0, %c0_i32 : i32, i32
  }
}

</mosaic_0001>

<bundles_post_ra>
// kernel: tpu_custom_call.1
= control target key start
LH: loop header
LB: loop body
LE: loop exit
PB: predicated region body
PF: predicated region fallthrough
CT: control target
= control target key end

     0   :  { %12 = vsyncpa [#allocation3], 0  ;;  %s860_s0 = inlined_call_operand.hbm [shape: f32[16,32], index: 0, kind: input, shape index: {}]   ;;  %s861_s1 = inlined_call_operand.hbm [shape: f32[32,32], index: 1, kind: input, shape index: {}]   ;;  %s862_s2 = inlined_call_operand.vmem [shape: f32[2,16], index: 2, kind: input, shape index: {}]   ;;  %s863_s3 = inlined_call_operand.hbm [shape: f32[32,160], index: 3, kind: input, shape index: {}]   ;;  %s864_s4 = inlined_call_operand.vmem [shape: f32[1,160], index: 4, kind: input, shape index: {}]   ;;  %s865_s5 = inlined_call_operand.hbm [shape: f32[32,128], index: 5, kind: input, shape index: {}]   ;;  %s866_s6 = inlined_call_operand.vmem [shape: f32[1,128], index: 6, kind: input, shape index: {}]   ;;  %s867_s7 = inlined_call_operand.hbm [shape: f32[16,48], index: 7, kind: output, shape index: {}]  }
   0x1   :  { %13 = vsyncpa [#allocation6], 0 }
   0x2   :  { %14 = vsyncpa [#allocation9], 0 }
   0x3   :  { %15 = vsyncpa [#allocation4], 0  ;;  %s710_s24 = smov [#allocation5]   ;;  %s711_s26 = smov [#allocation2]  }
   0x4   :  { %s33_s25 = sshll.u32 %s710_s24, 4  ;;  %s21_s27 = sshll.u32 %s711_s26, 4  ;;  %s34_s25 = int_to_ptr.vmem [resolvable:$true] %s33_s25  ;;  %s764_s27 = int_to_ptr.vmem [resolvable:$true] %s21_s27 }
   0x5   :  { %s592_s30 = scalar_lea.hbm %s861_s1, 512 }
   0x6   :  { %p593_p0 = scmp.ne.s32.totalorder %s861_s1, %s592_s30  ;;  %p596_p1 = scmp.lt.u32.totalorder %s592_s30, %s861_s1 }
   0x8   :  { %p598_p2 = pnand %p596_p1, %p593_p0 }
   0xa   :  { %601 = shalt.err (!%p598_p2)
}
   0xb   :  { %s602_s12 = scalar_lea.vmem %s34_s25, 512  ;;  %p607_p4 = scmp.lt.s32.totalorder %s34_s25, %s34_s25 }
   0xc   :  { %p603_p3 = scmp.ne.s32.totalorder %s34_s25, %s602_s12  ;;  %p608_p5 = scmp.lt.s32.totalorder %s602_s12, %s602_s12 }
   0xe   :  { %p609_p6 = por %p608_p5, %p607_p4 }
  0x10   :  { %p610_p7 = pnand %p609_p6, %p603_p3 }
  0x12   :  { %613 = shalt.err (!%p610_p7)
}
  0x13   :  { %s712_s13 = smov 128   ;;  %s713_s14 = smov 8  }
  0x14   :  { %39 = dma.hbm_to_vmem [thread:$0]  %s861_s1, 512, %s34_s25, [#allocation6], %s712_s13, %s712_s13, %s713_s14  }
  0x15   :  { %s614_s19 = scalar_lea.hbm %s860_s0, 256 }
  0x16   :  { %p615_p8 = scmp.ne.s32.totalorder %s860_s0, %s614_s19  ;;  %p618_p9 = scmp.lt.u32.totalorder %s614_s19, %s860_s0 }
  0x18   :  { %p620_p10 = pnand %p618_p9, %p615_p8 }
  0x1a   :  { %623 = shalt.err (!%p620_p10)
}
  0x1b   :  { %s624_s24 = scalar_lea.vmem %s764_s27, 256  ;;  %p629_p12 = scmp.lt.s32.totalorder %s764_s27, %s764_s27 }
  0x1c   :  { %p625_p11 = scmp.ne.s32.totalorder %s764_s27, %s624_s24  ;;  %p630_p13 = scmp.lt.s32.totalorder %s624_s24, %s624_s24 }
  0x1e   :  { %p631_p0 = por %p630_p13, %p629_p12 }
  0x20   :  { %p632_p1 = pnand %p631_p0, %p625_p11 }
  0x22   :  { %635 = shalt.err (!%p632_p1)
}
  0x23   :  { %27 = dma.hbm_to_vmem [thread:$0]  %s860_s0, 256, %s764_s27, [#allocation3], %s712_s13, %s712_s13, %s713_s14  }
  0x24   :  { %s714_s26 = smov [#allocation7]   ;;  %s636_s8 = scalar_lea.hbm %s863_s3, 1024 }
  0x25   :  { %s47_s28 = sshll.u32 %s714_s26, 4  ;;  %p637_p2 = scmp.ne.s32.totalorder %s863_s3, %s636_s8  ;;  %s48_s28 = int_to_ptr.vmem [resolvable:$true] %s47_s28 }
  0x26   :  { %p640_p3 = scmp.lt.u32.totalorder %s636_s8, %s863_s3 }
  0x28   :  { %p642_p4 = pnand %p640_p3, %p637_p2 }
  0x2a   :  { %645 = shalt.err (!%p642_p4)
}
  0x2b   :  { %s646_s15 = scalar_lea.vmem %s48_s28, 1024  ;;  %p651_p6 = scmp.lt.s32.totalorder %s48_s28, %s48_s28 }
  0x2c   :  { %p647_p5 = scmp.ne.s32.totalorder %s48_s28, %s646_s15  ;;  %p652_p7 = scmp.lt.s32.totalorder %s646_s15, %s646_s15 }
  0x2e   :  { %p653_p8 = por %p652_p7, %p651_p6 }
  0x30   :  { %p654_p9 = pnand %p653_p8, %p647_p5 }
  0x32   :  { %657 = shalt.err (!%p654_p9)
}
  0x33   :  { %s715_s0 = smov 256   ;;  %s716_s27 = smov 16  }
  0x34   :  { %53 = dma.hbm_to_vmem [thread:$0]  %s863_s3, 1024, %s48_s28, [#allocation6], %s715_s0, %s715_s0, %s716_s27  }
  0x35   :  { %s717_s18 = smov [#allocation8]   ;;  %s658_s22 = scalar_lea.hbm %s865_s5, 512 }
  0x36   :  { %s61_s19 = sshll.u32 %s717_s18, 4  ;;  %p659_p10 = scmp.ne.s32.totalorder %s865_s5, %s658_s22  ;;  %s62_s19 = int_to_ptr.vmem [resolvable:$true] %s61_s19 }
  0x37   :  { %p662_p11 = scmp.lt.u32.totalorder %s658_s22, %s865_s5 }
  0x39   :  { %p664_p12 = pnand %p662_p11, %p659_p10 }
  0x3b   :  { %667 = shalt.err (!%p664_p12)
}
  0x3c   :  { %s668_s26 = scalar_lea.vmem %s62_s19, 512  ;;  %p673_p0 = scmp.lt.s32.totalorder %s62_s19, %s62_s19 }
  0x3d   :  { %p669_p13 = scmp.ne.s32.totalorder %s62_s19, %s668_s26  ;;  %p674_p1 = scmp.lt.s32.totalorder %s668_s26, %s668_s26 }
  0x3f   :  { %p675_p2 = por %p674_p1, %p673_p0 }
  0x41   :  { %p676_p3 = pnand %p675_p2, %p669_p13 }
  0x43   :  { %679 = shalt.err (!%p676_p3)
}
  0x44   :  { %67 = dma.hbm_to_vmem [thread:$0]  %s865_s5, 512, %s62_s19, [#allocation9], %s712_s13, %s712_s13, %s713_s14  }
  0x45   :  { %702 = dma.done.wait [#allocation3], 256  }
  0x46   :  { %703 = vsyncadd [#allocation3], 4294967040 }
  0x47   :  { %704 = dma.done.wait [#allocation6], 1536  }
  0x48   :  { %705 = vsyncadd [#allocation6], 4294965760 }
  0x49   :  { %706 = dma.done.wait [#allocation9], 512  }
  0x4a   :  { %707 = vsyncadd [#allocation9], 4294966784  ;;  %v718_v0 = vmov 0.0   ;;  %vm104_vm0 = vcmask 261120   ;;  %v194_v1 = vld [vmem:[#allocation8] sm:$0xff]  ;;  %v195_v2 = vld [vmem:[#allocation8 + $0x8] sm:$0xff]  ;;  %v94_v26 = vlaneseq }
  0x4b   :  { %175 = vmatprep.mubr.f32.mxu0 %v718_v0  ;;  %v196_v3 = vld [vmem:[#allocation8 + $0x10] sm:$0xff]  ;;  %v564_v4 = vpack.c.bf16 %v195_v2, %v194_v1  ;;  %v197_v5 = vld [vmem:[#allocation8 + $0x18] sm:$0xff]  ;;  %v190_v6 = vld [vmem:[#allocation5] sm:$0xff]  ;;  %v719_v25 = vmov 0.0|0.0   ;;  %vm720_vm1 = vmmov 0   ;;  %s722_s9 = smov 32  }
  0x4c   :  { %v568_v7 = vpack.c.bf16 %v197_v5, %v196_v3  ;;  %536 = vmatprep.mubr.msk.f32.mxu1 %vm104_vm0, %v190_v6  ;;  %v85_v8 = vld [vmem:[#allocation7 + $0x8] sm:$0xff]  ;;  %v87_v9 = vld [vmem:[#allocation7 + $0x18] sm:$0xff]  ;;  %v84_v10 = vld [vmem:[#allocation7] sm:$0xff]  ;;  %v95_v27 = vshrl.u32 %v94_v26, 7  ;;  %v721_v52 = vmov 1966171168  }
  0x4d   :  { %565 = vmatprep.subr.bf16.mxu1 %v564_v4  ;;  %v556_v11 = vpack.c.bf16 %v87_v9, %v85_v8  ;;  %v86_v12 = vld [vmem:[#allocation7 + $0x10] sm:$0xff]  ;;  %v89_v14 = vld [vmem:[#allocation7 + $0x28] sm:$0xff]  ;;  %v91_v15 = vld [vmem:[#allocation7 + $0x38] sm:$0xff]  ;;  %v313_v53 = vunpack.c.l.s4 %v721_v52  ;;  %vm484_vm2 = vcmask 392448   ;;  %s723_s10 = smov [#allocation10]  }
  0x4e   :  { %567 = vmatpush3.bf16.msra.mxu1 %v564_v4  ;;  %v558_v13 = vpack.c.bf16 %v86_v12, %v84_v10  ;;  %v88_v16 = vld [vmem:[#allocation7 + $0x20] sm:$0xff]  ;;  %v560_v17 = vpack.c.bf16 %v91_v15, %v89_v14  ;;  %v90_v18 = vld [vmem:[#allocation7 + $0x30] sm:$0xff]  ;;  %v191_v20 = vld [vmem:[#allocation5 + $0x8] sm:$0xff]  ;;  %v100_v28 = vsub.s32 1, %v95_v27  ;;  %v96_v35 = vsub.s32 0, %v95_v27  ;;  %s492_s11 = sshll.u32 %s723_s10, 4  ;;  %s493_s11 = int_to_ptr.vmem [resolvable:$true] %s492_s11 }
  0x4f   :  { %569 = vmatprep.subr.bf16.mxu1 %v568_v7  ;;  %557 = vmatprep.subr.bf16.mxu0 %v556_v11  ;;  %v562_v19 = vpack.c.bf16 %v90_v18, %v88_v16  ;;  %v192_v21 = vld [vmem:[#allocation5 + $0x10] sm:$0xff]  ;;  %v193_v23 = vld [vmem:[#allocation5 + $0x18] sm:$0xff]  ;;  %v314_v54 = vunpack.c.0.s8 %v313_v53  ;;  %p685_p5 = scmp.lt.s32.totalorder %s493_s11, %s493_s11 }
  0x50   :  { %559 = vmatpush1.bf16.msra.mxu0 %v558_v13  ;;  %v82_v22 = vld [vmem:[#allocation2] sm:$0xff]  ;;  %v83_v24 = vld [vmem:[#allocation2 + $0x8] sm:$0xff] }
  0x51   :  { %561 = vmatprep.subr.bf16.mxu0 %v560_v17  ;;  %v92_v29 = vld [vmem:[%s864_s4] sm:$0x3]  ;;  %v317_v55 = vsub.s32 %v314_v54, %v95_v27 }
  0x52   :  { %571 = vmatpush3.bf16.msra.mxu1 %v568_v7  ;;  %v508_v30 = vld [vmem:[%s866_s6] ss:$0 sm:$0xff]  ;;  %v101_v32 = vrot.slane %v92_v29, %v100_v28  ;;  %v97_v44 = vrot.slane %v92_v29, %v96_v35 }
  0x53   :  { %575 = vmatprep.subr.bf16.mxu1 %v719_v25  ;;  %v513_v56 = vld.sshfl [vmem:[%s862_s2] sm:$0x11 pattern:$0x75316420]  ;;  %s680_s2 = scalar_lea.vmem %s493_s11, 256 }
  0x54   :  { %563 = vmatpush1.bf16.msra.mxu0 %v562_v19  ;;  %v318_v57 = vrot.slane %v513_v56, %v317_v55  ;;  %v311_v58 = vcombine.high %v513_v56, %v513_v56  ;;  %p681_p4 = scmp.ne.s32.totalorder %s493_s11, %s680_s2  ;;  %p686_p6 = scmp.lt.s32.totalorder %s680_s2, %s680_s2 }
  0x55   :  { %537 = vmatmul.mubr.msk.f32.vlgmr.msra.gmra.mrb[0].mxu1 %vm104_vm0, %v191_v20  ;;  %572 = vmatprep.subr.bf16.mxu0 %v719_v25 }
  0x56   :  { %539 = vmatprep.mubr.msk.f32.mxu1 %vm104_vm0, %v192_v21  ;;  %v329_v59 = vrot.slane %v318_v57, %v96_v35  ;;  %v325_v60 = vrot.slane %v311_v58, %v317_v55  ;;  %p687_p7 = por %p686_p6, %p685_p5 }
  0x57   :  { %506 = vmatmul.mubr.msk.f32.vlgmr.msra.gmra.mrb[0].mxu0 %vm104_vm0, %v82_v22 }
  0x58   :  { %181 = vmatprep.mubr.f32.mxu0 %v718_v0  ;;  %p688_p8 = pnand %p687_p7, %p681_p4 }
  0x59   :  { %540 = vmatmul.mubr.msk.f32.gmra.mrb[2].mxu1 %vm104_vm0, %v193_v23 }
  0x5a   :  { %553 = vmatprep.mubr.msk.f32.mxu1 %vm720_vm1, %v718_v0 }
  0x5b   :  { %507 = vmatmul.mubr.msk.f32.gmra.mrb[2].mxu0 %vm104_vm0, %v83_v24 }
  0x5c   :  { %546 = vmatprep.mubr.msk.f32.mxu0 %vm720_vm1, %v718_v0  ;;  %v333_v0 = vrot.slane %v325_v60, %v96_v35 }
 0x128   :  { %v538_v31 = vpop.f32.mrb[0].mxu1 }
 0x129   :  { %v289_v33 = vadd.f32 %v538_v31, %v508_v30  ;;  %v283_v34 = vpop.f32.mrb[1].mxu1 }
 0x12a   :  { %v284_v36 = vadd.f32 %v508_v30, %v283_v34  ;;  %v177_v37 = vpop.f32.mrb[0].mxu0 }
 0x12b   :  { %v179_v38 = vpop.f32.mrb[1].mxu0  ;;  %v178_v50 = vadd.f32 %v177_v37, %v97_v44 }
 0x12c   :  { %v573_v39 = vpack.c.bf16 %v289_v33, %v284_v36  ;;  %v541_v40 = vpop.f32.mrb[2].mxu1  ;;  %v180_v41 = vadd.f32 %v179_v38, %v101_v32 }
 0x12d   :  { %v299_v42 = vadd.f32 %v541_v40, %v508_v30  ;;  %v293_v43 = vpop.f32.mrb[3].mxu1 }
 0x12e   :  { %v294_v45 = vadd.f32 %v508_v30, %v293_v43  ;;  %574 = vmatpush3.bf16.xpose.msra.mxu0 %v573_v39  ;;  %188 = vst.msk [vmem:[#allocation10] sm:$0xff] %vm104_vm0, %v180_v41  ;;  %v183_v46 = vpop.f32.mrb[2].mxu0 }
 0x12f   :  { %v185_v47 = vpop.f32.mrb[3].mxu0  ;;  %v184_v51 = vadd.f32 %v183_v46, %v97_v44 }
 0x130   :  { %v576_v48 = vpack.c.bf16 %v299_v42, %v294_v45  ;;  %v186_v49 = vadd.f32 %v185_v47, %v101_v32 }
 0x132   :  { %577 = vmatpush3.bf16.xpose.msra.mxu1 %v576_v48  ;;  %189 = vst.msk [vmem:[#allocation10 + $0x8] sm:$0xff] %vm104_vm0, %v186_v49 }
 0x135   :  { %547 = vmatmul.mubr.f32.vlgmr.msra.gmra.mrb[4].mxu0 %v178_v50 }
 0x139   :  { %554 = vmatmul.mubr.f32.vlgmr.msra.gmra.mrb[4].mxu1 %v184_v51 }
 0x208   :  { %v402_v61 = vpop.f32.mrb[4].mxu0 }
 0x209   :  { %v403_v62 = vadd.f32 %v402_v61, %v329_v59  ;;  %v548_v63 = vpop.f32.mrb[5].mxu0 }
 0x20b   :  { %478 = vrot.lane.b32.xlu0 %v403_v62, %s722_s9 }
 0x20c   :  { %v472_v1 = vpop.f32.mrb[4].mxu1 }
 0x20d   :  { %v473_v2 = vadd.f32 %v472_v1, %v333_v0  ;;  %v555_v3 = vpop.f32.mrb[5].mxu1 }
 0x20f   :  { %480 = vrot.lane.b32.xlu0 %v473_v2, %s722_s9 }
 0x27d   :  { %v479_v4 = vpop.permute.xlu0 %478 }
 0x27e   :  { %485 = vst.msk [vmem:[#allocation10] sm:$0xff] %vm484_vm2, %v479_v4 }
 0x281   :  { %v481_v5 = vpop.permute.xlu0 %480 }
 0x282   :  { %486 = vst.msk [vmem:[#allocation10 + $0x8] sm:$0xff] %vm484_vm2, %v481_v5 }
 0x283   :  { %691 = shalt.err (!%p688_p8)
}
 0x284   :  { %s692_s0 = scalar_lea.hbm %s867_s7, 256 }
 0x285   :  { %p693_p9 = scmp.ne.s32.totalorder %s867_s7, %s692_s0  ;;  %p696_p10 = scmp.lt.u32.totalorder %s692_s0, %s867_s7 }
 0x287   :  { %p698_p11 = pnand %p696_p10, %p693_p9 }
 0x289   :  { %701 = shalt.err (!%p698_p11)
}
 0x28a   :  { %498 = dma.vmem_to_hbm [thread:$0]  %s493_s11, 256, %s867_s7, [#allocation4], %s712_s13, %s712_s13, %s713_s14  }
 0x28b   :  { %708 = dma.done.wait [#allocation4], 256  }
 0x28c   :  { %709 = vsyncadd [#allocation4], 4294967040 }
 0x28d   :  { %502 = vsyncpa [#allocation3], 1 }
 0x28e   :  { %503 = vsyncpa [#allocation6], 1 }
 0x28f   :  { %504 = vsyncpa [#allocation9], 1 }
 0x290   :  { %505 = vsyncpa [#allocation4], 1 }

// kernel: tpu_custom_call.1
= control target key start
LH: loop header
LB: loop body
LE: loop exit
PB: predicated region body
PF: predicated region fallthrough
CT: control target
= control target key end

     0   :  { %12 = vsyncpa [#allocation3], 0  ;;  %s860_s0 = inlined_call_operand.hbm [shape: f32[16,32], index: 0, kind: input, shape index: {}]   ;;  %s861_s1 = inlined_call_operand.hbm [shape: f32[32,32], index: 1, kind: input, shape index: {}]   ;;  %s862_s2 = inlined_call_operand.vmem [shape: f32[2,16], index: 2, kind: input, shape index: {}]   ;;  %s863_s3 = inlined_call_operand.hbm [shape: f32[32,160], index: 3, kind: input, shape index: {}]   ;;  %s864_s4 = inlined_call_operand.vmem [shape: f32[1,160], index: 4, kind: input, shape index: {}]   ;;  %s865_s5 = inlined_call_operand.hbm [shape: f32[32,128], index: 5, kind: input, shape index: {}]   ;;  %s866_s6 = inlined_call_operand.vmem [shape: f32[1,128], index: 6, kind: input, shape index: {}]   ;;  %s867_s7 = inlined_call_operand.hbm [shape: f32[16,48], index: 7, kind: output, shape index: {}]  }
   0x1   :  { %13 = vsyncpa [#allocation6], 0 }
   0x2   :  { %14 = vsyncpa [#allocation9], 0 }
   0x3   :  { %15 = vsyncpa [#allocation4], 0  ;;  %s710_s24 = smov [#allocation5]   ;;  %s711_s26 = smov [#allocation2]  }
   0x4   :  { %s33_s25 = sshll.u32 %s710_s24, 4  ;;  %s21_s27 = sshll.u32 %s711_s26, 4  ;;  %s34_s25 = int_to_ptr.vmem [resolvable:$true] %s33_s25  ;;  %s764_s27 = int_to_ptr.vmem [resolvable:$true] %s21_s27 }
   0x5   :  { %s592_s30 = scalar_lea.hbm %s861_s1, 512 }
   0x6   :  { %p593_p0 = scmp.ne.s32.totalorder %s861_s1, %s592_s30  ;;  %p596_p1 = scmp.lt.u32.totalorder %s592_s30, %s861_s1 }
   0x8   :  { %p598_p2 = pnand %p596_p1, %p593_p0 }
   0xa   :  { %601 = shalt.err (!%p598_p2)
}
   0xb   :  { %s602_s12 = scalar_lea.vmem %s34_s25, 512  ;;  %p607_p4 = scmp.lt.s32.totalorder %s34_s25, %s34_s25 }
   0xc   :  { %p603_p3 = scmp.ne.s32.totalorder %s34_s25, %s602_s12  ;;  %p608_p5 = scmp.lt.s32.totalorder %s602_s12, %s602_s12 }
   0xe   :  { %p609_p6 = por %p608_p5, %p607_p4 }
  0x10   :  { %p610_p7 = pnand %p609_p6, %p603_p3 }
  0x12   :  { %613 = shalt.err (!%p610_p7)
}
  0x13   :  { %s712_s13 = smov 128   ;;  %s713_s14 = smov 8  }
  0x14   :  { %39 = dma.hbm_to_vmem [thread:$0]  %s861_s1, 512, %s34_s25, [#allocation6], %s712_s13, %s712_s13, %s713_s14  }
  0x15   :  { %s614_s19 = scalar_lea.hbm %s860_s0, 256 }
  0x16   :  { %p615_p8 = scmp.ne.s32.totalorder %s860_s0, %s614_s19  ;;  %p618_p9 = scmp.lt.u32.totalorder %s614_s19, %s860_s0 }
  0x18   :  { %p620_p10 = pnand %p618_p9, %p615_p8 }
  0x1a   :  { %623 = shalt.err (!%p620_p10)
}
  0x1b   :  { %s624_s24 = scalar_lea.vmem %s764_s27, 256  ;;  %p629_p12 = scmp.lt.s32.totalorder %s764_s27, %s764_s27 }
  0x1c   :  { %p625_p11 = scmp.ne.s32.totalorder %s764_s27, %s624_s24  ;;  %p630_p13 = scmp.lt.s32.totalorder %s624_s24, %s624_s24 }
  0x1e   :  { %p631_p0 = por %p630_p13, %p629_p12 }
  0x20   :  { %p632_p1 = pnand %p631_p0, %p625_p11 }
  0x22   :  { %635 = shalt.err (!%p632_p1)
}
  0x23   :  { %27 = dma.hbm_to_vmem [thread:$0]  %s860_s0, 256, %s764_s27, [#allocation3], %s712_s13, %s712_s13, %s713_s14  }
  0x24   :  { %s714_s26 = smov [#allocation7]   ;;  %s636_s8 = scalar_lea.hbm %s863_s3, 1024 }
  0x25   :  { %s47_s28 = sshll.u32 %s714_s26, 4  ;;  %p637_p2 = scmp.ne.s32.totalorder %s863_s3, %s636_s8  ;;  %s48_s28 = int_to_ptr.vmem [resolvable:$true] %s47_s28 }
  0x26   :  { %p640_p3 = scmp.lt.u32.totalorder %s636_s8, %s863_s3 }
  0x28   :  { %p642_p4 = pnand %p640_p3, %p637_p2 }
  0x2a   :  { %645 = shalt.err (!%p642_p4)
}
  0x2b   :  { %s646_s15 = scalar_lea.vmem %s48_s28, 1024  ;;  %p651_p6 = scmp.lt.s32.totalorder %s48_s28, %s48_s28 }
  0x2c   :  { %p647_p5 = scmp.ne.s32.totalorder %s48_s28, %s646_s15  ;;  %p652_p7 = scmp.lt.s32.totalorder %s646_s15, %s646_s15 }
  0x2e   :  { %p653_p8 = por %p652_p7, %p651_p6 }
  0x30   :  { %p654_p9 = pnand %p653_p8, %p647_p5 }
  0x32   :  { %657 = shalt.err (!%p654_p9)
}
  0x33   :  { %s715_s0 = smov 256   ;;  %s716_s27 = smov 16  }
  0x34   :  { %53 = dma.hbm_to_vmem [thread:$0]  %s863_s3, 1024, %s48_s28, [#allocation6], %s715_s0, %s715_s0, %s716_s27  }
  0x35   :  { %s717_s18 = smov [#allocation8]   ;;  %s658_s22 = scalar_lea.hbm %s865_s5, 512 }
  0x36   :  { %s61_s19 = sshll.u32 %s717_s18, 4  ;;  %p659_p10 = scmp.ne.s32.totalorder %s865_s5, %s658_s22  ;;  %s62_s19 = int_to_ptr.vmem [resolvable:$true] %s61_s19 }
  0x37   :  { %p662_p11 = scmp.lt.u32.totalorder %s658_s22, %s865_s5 }
  0x39   :  { %p664_p12 = pnand %p662_p11, %p659_p10 }
  0x3b   :  { %667 = shalt.err (!%p664_p12)
}
  0x3c   :  { %s668_s26 = scalar_lea.vmem %s62_s19, 512  ;;  %p673_p0 = scmp.lt.s32.totalorder %s62_s19, %s62_s19 }
  0x3d   :  { %p669_p13 = scmp.ne.s32.totalorder %s62_s19, %s668_s26  ;;  %p674_p1 = scmp.lt.s32.totalorder %s668_s26, %s668_s26 }
  0x3f   :  { %p675_p2 = por %p674_p1, %p673_p0 }
  0x41   :  { %p676_p3 = pnand %p675_p2, %p669_p13 }
  0x43   :  { %679 = shalt.err (!%p676_p3)
}
  0x44   :  { %67 = dma.hbm_to_vmem [thread:$0]  %s865_s5, 512, %s62_s19, [#allocation9], %s712_s13, %s712_s13, %s713_s14  }
  0x45   :  { %702 = dma.done.wait [#allocation3], 256  }
  0x46   :  { %703 = vsyncadd [#allocation3], 4294967040 }
  0x47   :  { %704 = dma.done.wait [#allocation6], 1536  }
  0x48   :  { %705 = vsyncadd [#allocation6], 4294965760 }
  0x49   :  { %706 = dma.done.wait [#allocation9], 512  }
  0x4a   :  { %707 = vsyncadd [#allocation9], 4294966784  ;;  %v718_v0 = vmov 0.0   ;;  %vm104_vm0 = vcmask 261120   ;;  %v194_v1 = vld [vmem:[#allocation8] sm:$0xff]  ;;  %v195_v2 = vld [vmem:[#allocation8 + $0x8] sm:$0xff]  ;;  %v94_v26 = vlaneseq }
  0x4b   :  { %175 = vmatprep.mubr.f32.mxu0 %v718_v0  ;;  %v196_v3 = vld [vmem:[#allocation8 + $0x10] sm:$0xff]  ;;  %v564_v4 = vpack.c.bf16 %v195_v2, %v194_v1  ;;  %v197_v5 = vld [vmem:[#allocation8 + $0x18] sm:$0xff]  ;;  %v190_v6 = vld [vmem:[#allocation5] sm:$0xff]  ;;  %v719_v25 = vmov 0.0|0.0   ;;  %vm720_vm1 = vmmov 0   ;;  %s722_s9 = smov 32  }
  0x4c   :  { %v568_v7 = vpack.c.bf16 %v197_v5, %v196_v3  ;;  %536 = vmatprep.mubr.msk.f32.mxu1 %vm104_vm0, %v190_v6  ;;  %v85_v8 = vld [vmem:[#allocation7 + $0x8] sm:$0xff]  ;;  %v87_v9 = vld [vmem:[#allocation7 + $0x18] sm:$0xff]  ;;  %v84_v10 = vld [vmem:[#allocation7] sm:$0xff]  ;;  %v95_v27 = vshrl.u32 %v94_v26, 7  ;;  %v721_v52 = vmov 1966171168  }
  0x4d   :  { %565 = vmatprep.subr.bf16.mxu1 %v564_v4  ;;  %v556_v11 = vpack.c.bf16 %v87_v9, %v85_v8  ;;  %v86_v12 = vld [vmem:[#allocation7 + $0x10] sm:$0xff]  ;;  %v89_v14 = vld [vmem:[#allocation7 + $0x28] sm:$0xff]  ;;  %v91_v15 = vld [vmem:[#allocation7 + $0x38] sm:$0xff]  ;;  %v313_v53 = vunpack.c.l.s4 %v721_v52  ;;  %vm484_vm2 = vcmask 392448   ;;  %s723_s10 = smov [#allocation10]  }
  0x4e   :  { %567 = vmatpush3.bf16.msra.mxu1 %v564_v4  ;;  %v558_v13 = vpack.c.bf16 %v86_v12, %v84_v10  ;;  %v88_v16 = vld [vmem:[#allocation7 + $0x20] sm:$0xff]  ;;  %v560_v17 = vpack.c.bf16 %v91_v15, %v89_v14  ;;  %v90_v18 = vld [vmem:[#allocation7 + $0x30] sm:$0xff]  ;;  %v191_v20 = vld [vmem:[#allocation5 + $0x8] sm:$0xff]  ;;  %v100_v28 = vsub.s32 1, %v95_v27  ;;  %v96_v35 = vsub.s32 0, %v95_v27  ;;  %s492_s11 = sshll.u32 %s723_s10, 4  ;;  %s493_s11 = int_to_ptr.vmem [resolvable:$true] %s492_s11 }
  0x4f   :  { %569 = vmatprep.subr.bf16.mxu1 %v568_v7  ;;  %557 = vmatprep.subr.bf16.mxu0 %v556_v11  ;;  %v562_v19 = vpack.c.bf16 %v90_v18, %v88_v16  ;;  %v192_v21 = vld [vmem:[#allocation5 + $0x10] sm:$0xff]  ;;  %v193_v23 = vld [vmem:[#allocation5 + $0x18] sm:$0xff]  ;;  %v314_v54 = vunpack.c.0.s8 %v313_v53  ;;  %p685_p5 = scmp.lt.s32.totalorder %s493_s11, %s493_s11 }
  0x50   :  { %559 = vmatpush1.bf16.msra.mxu0 %v558_v13  ;;  %v82_v22 = vld [vmem:[#allocation2] sm:$0xff]  ;;  %v83_v24 = vld [vmem:[#allocation2 + $0x8] sm:$0xff] }
  0x51   :  { %561 = vmatprep.subr.bf16.mxu0 %v560_v17  ;;  %v92_v29 = vld [vmem:[%s864_s4] sm:$0x3]  ;;  %v317_v55 = vsub.s32 %v314_v54, %v95_v27 }
  0x52   :  { %571 = vmatpush3.bf16.msra.mxu1 %v568_v7  ;;  %v508_v30 = vld [vmem:[%s866_s6] ss:$0 sm:$0xff]  ;;  %v101_v32 = vrot.slane %v92_v29, %v100_v28  ;;  %v97_v44 = vrot.slane %v92_v29, %v96_v35 }
  0x53   :  { %575 = vmatprep.subr.bf16.mxu1 %v719_v25  ;;  %v513_v56 = vld.sshfl [vmem:[%s862_s2] sm:$0x11 pattern:$0x75316420]  ;;  %s680_s2 = scalar_lea.vmem %s493_s11, 256 }
  0x54   :  { %563 = vmatpush1.bf16.msra.mxu0 %v562_v19  ;;  %v318_v57 = vrot.slane %v513_v56, %v317_v55  ;;  %v311_v58 = vcombine.high %v513_v56, %v513_v56  ;;  %p681_p4 = scmp.ne.s32.totalorder %s493_s11, %s680_s2  ;;  %p686_p6 = scmp.lt.s32.totalorder %s680_s2, %s680_s2 }
  0x55   :  { %537 = vmatmul.mubr.msk.f32.vlgmr.msra.gmra.mrb[0].mxu1 %vm104_vm0, %v191_v20  ;;  %572 = vmatprep.subr.bf16.mxu0 %v719_v25 }
  0x56   :  { %539 = vmatprep.mubr.msk.f32.mxu1 %vm104_vm0, %v192_v21  ;;  %v329_v59 = vrot.slane %v318_v57, %v96_v35  ;;  %v325_v60 = vrot.slane %v311_v58, %v317_v55  ;;  %p687_p7 = por %p686_p6, %p685_p5 }
  0x57   :  { %506 = vmatmul.mubr.msk.f32.vlgmr.msra.gmra.mrb[0].mxu0 %vm104_vm0, %v82_v22 }
  0x58   :  { %181 = vmatprep.mubr.f32.mxu0 %v718_v0  ;;  %p688_p8 = pnand %p687_p7, %p681_p4 }
  0x59   :  { %540 = vmatmul.mubr.msk.f32.gmra.mrb[2].mxu1 %vm104_vm0, %v193_v23 }
  0x5a   :  { %553 = vmatprep.mubr.msk.f32.mxu1 %vm720_vm1, %v718_v0 }
  0x5b   :  { %507 = vmatmul.mubr.msk.f32.gmra.mrb[2].mxu0 %vm104_vm0, %v83_v24 }
  0x5c   :  { %546 = vmatprep.mubr.msk.f32.mxu0 %vm720_vm1, %v718_v0  ;;  %v333_v0 = vrot.slane %v325_v60, %v96_v35 }
 0x128   :  { %v538_v31 = vpop.f32.mrb[0].mxu1 }
 0x129   :  { %v289_v33 = vadd.f32 %v538_v31, %v508_v30  ;;  %v283_v34 = vpop.f32.mrb[1].mxu1 }
 0x12a   :  { %v284_v36 = vadd.f32 %v508_v30, %v283_v34  ;;  %v177_v37 = vpop.f32.mrb[0].mxu0 }
 0x12b   :  { %v179_v38 = vpop.f32.mrb[1].mxu0  ;;  %v178_v50 = vadd.f32 %v177_v37, %v97_v44 }
 0x12c   :  { %v573_v39 = vpack.c.bf16 %v289_v33, %v284_v36  ;;  %v541_v40 = vpop.f32.mrb[2].mxu1  ;;  %v180_v41 = vadd.f32 %v179_v38, %v101_v32 }
 0x12d   :  { %v299_v42 = vadd.f32 %v541_v40, %v508_v30  ;;  %v293_v43 = vpop.f32.mrb[3].mxu1 }
 0x12e   :  { %v294_v45 = vadd.f32 %v508_v30, %v293_v43  ;;  %574 = vmatpush3.bf16.xpose.msra.mxu0 %v573_v39  ;;  %188 = vst.msk [vmem:[#allocation10] sm:$0xff] %vm104_vm0, %v180_v41  ;;  %v183_v46 = vpop.f32.mrb[2].mxu0 }
 0x12f   :  { %v185_v47 = vpop.f32.mrb[3].mxu0  ;;  %v184_v51 = vadd.f32 %v183_v46, %v97_v44 }
 0x130   :  { %v576_v48 = vpack.c.bf16 %v299_v42, %v294_v45  ;;  %v186_v49 = vadd.f32 %v185_v47, %v101_v32 }
 0x132   :  { %577 = vmatpush3.bf16.xpose.msra.mxu1 %v576_v48  ;;  %189 = vst.msk [vmem:[#allocation10 + $0x8] sm:$0xff] %vm104_vm0, %v186_v49 }
 0x135   :  { %547 = vmatmul.mubr.f32.vlgmr.msra.gmra.mrb[4].mxu0 %v178_v50 }
 0x139   :  { %554 = vmatmul.mubr.f32.vlgmr.msra.gmra.mrb[4].mxu1 %v184_v51 }
 0x208   :  { %v402_v61 = vpop.f32.mrb[4].mxu0 }
 0x209   :  { %v403_v62 = vadd.f32 %v402_v61, %v329_v59  ;;  %v548_v63 = vpop.f32.mrb[5].mxu0 }
 0x20b   :  { %478 = vrot.lane.b32.xlu0 %v403_v62, %s722_s9 }
 0x20c   :  { %v472_v1 = vpop.f32.mrb[4].mxu1 }
 0x20d   :  { %v473_v2 = vadd.f32 %v472_v1, %v333_v0  ;;  %v555_v3 = vpop.f32.mrb[5].mxu1 }
 0x20f   :  { %480 = vrot.lane.b32.xlu0 %v473_v2, %s722_s9 }
 0x27d   :  { %v479_v4 = vpop.permute.xlu0 %478 }
 0x27e   :  { %485 = vst.msk [vmem:[#allocation10] sm:$0xff] %vm484_vm2, %v479_v4 }
 0x281   :  { %v481_v5 = vpop.permute.xlu0 %480 }
 0x282   :  { %486 = vst.msk [vmem:[#allocation10 + $0x8] sm:$0xff] %vm484_vm2, %v481_v5 }
 0x283   :  { %691 = shalt.err (!%p688_p8)
}
 0x284   :  { %s692_s0 = scalar_lea.hbm %s867_s7, 256 }
 0x285   :  { %p693_p9 = scmp.ne.s32.totalorder %s867_s7, %s692_s0  ;;  %p696_p10 = scmp.lt.u32.totalorder %s692_s0, %s867_s7 }
 0x287   :  { %p698_p11 = pnand %p696_p10, %p693_p9 }
 0x289   :  { %701 = shalt.err (!%p698_p11)
}
 0x28a   :  { %498 = dma.vmem_to_hbm [thread:$0]  %s493_s11, 256, %s867_s7, [#allocation4], %s712_s13, %s712_s13, %s713_s14  }
 0x28b   :  { %708 = dma.done.wait [#allocation4], 256  }
 0x28c   :  { %709 = vsyncadd [#allocation4], 4294967040 }
 0x28d   :  { %502 = vsyncpa [#allocation3], 1 }
 0x28e   :  { %503 = vsyncpa [#allocation6], 1 }
 0x28f   :  { %504 = vsyncpa [#allocation9], 1 }
 0x290   :  { %505 = vsyncpa [#allocation4], 1 }

</bundles_post_ra>
